<compile_context>
chip_gen: v7x
topology: tpu7x:2x2x1
jax: 0.10.0
libtpu: 0.0.40
codegen_flags: <defaults>
</compile_context>

<pallas_src>
import functools

import jax
import jax.numpy as jnp
from jax import lax
from jax.experimental import pallas as pl
from jax.experimental.pallas import tpu as pltpu


def _softmax_rows_kernel(x_ref, o_ref, *, rsub, n_chunks):
    """Row-wise softmax over the lane (last) axis of a (TR, HW) VMEM tile."""

    def one_chunk(r):
        x = x_ref[pl.ds(r, rsub), :].astype(jnp.float32)
        m = jnp.max(x, axis=-1, keepdims=True)
        e = jnp.exp(x - m)                      # per-element, EUP
        s = jnp.sum(e, axis=-1, keepdims=True)  # per-row
        # Exact per-row division: negligible cost vs. the per-element exp,
        # keeps each row summing to 1 at full f32 precision.
        o_ref[pl.ds(r, rsub), :] = (e / s).astype(o_ref.dtype)

    if n_chunks == 1:
        one_chunk(0)
    else:
        def body(ci, carry):
            one_chunk(pl.multiple_of(ci * rsub, rsub))
            return carry

        # Bounded unroll: each chunk holds ~2*rsub*hw f32 of live data; fully
        # unrolling up to 32 chunks would spill past the 64-vreg file and steal
        # vld/vst slots from the streaming loads/stores.
        lax.fori_loop(0, n_chunks, body, 0, unroll=min(n_chunks, 8))


def _tile_rows(rows, hw):
    """Pick (rsub, tr, n_chunks) for the row axis.

    rsub: rows per in-kernel sub-chunk (multiple of 8; bounds the vreg-resident
          f32 working set x + e to roughly <= 128 KiB).
    tr:   rows per DMA block (~4 MiB f32 target, <= 32 sub-chunks), shrunk so
          the grid has >= 2 steps when rows allow it (v7x: 2 TensorCores share
          a "parallel" grid axis).
    """

    def up8(v):
        return max(8, ((v + 7) // 8) * 8)

    rows8 = up8(rows)
    hw = max(hw, 1)

    # Working-set cap: 2 * rsub * hw * 4 B <= ~128 KiB  ->  rsub <= 16384 / hw.
    rsub = max(8, min(512, (16384 // hw) // 8 * 8))
    rsub = min(rsub, rows8)

    # ~4 MiB f32 DMA block, at most 32 in-kernel chunks.
    target_rows = max(rsub, (4 << 20) // (hw * 4))
    n_chunks = max(1, min(32, target_rows // rsub))
    tr = rsub * n_chunks

    # Don't tile far past the real row count.
    tr = min(tr, rows8)

    # Prefer >= 2 grid steps (v7x megacore) by splitting the rows roughly in
    # half instead of taking them all in a single block.
    if rows > rsub and tr >= rows:
        half = up8(pl.cdiv(rows, 2))
        tr = max(rsub, min(tr, ((half + rsub - 1) // rsub) * rsub))

    n_chunks = max(1, tr // rsub)
    tr = rsub * n_chunks
    return rsub, tr, n_chunks


def channel_norm(featmap):
    """featmap: (n, c, h, w) -> softmax over flattened spatial dim, (n, c, h*w)."""
    n, c, h, w = featmap.shape
    hw = h * w
    rows = n * c

    # Flatten independent softmax rows; no padding and no post-slice needed.
    x = featmap.reshape(rows, hw)

    rsub, tr, n_chunks = _tile_rows(rows, hw)

    # TODO(synk): for very large h*w (rows of ~1M+ f32 elements) add a lane-strip
    # online-softmax (second "arbitrary" grid axis with carried m/l scratch) so
    # the (tr, hw) block does not exceed VMEM.

    kernel = functools.partial(_softmax_rows_kernel, rsub=rsub, n_chunks=n_chunks)

    itemsize = jnp.dtype(featmap.dtype).itemsize
    cost = pl.CostEstimate(
        flops=4 * rows * hw,
        transcendentals=rows * hw,
        bytes_accessed=2 * rows * hw * itemsize,
    )

    out = pl.pallas_call(
        kernel,
        out_shape=jax.ShapeDtypeStruct((rows, hw), featmap.dtype),
        grid_spec=pltpu.PrefetchScalarGridSpec(
            num_scalar_prefetch=0,
            grid=(pl.cdiv(rows, tr),),
            # Lane dim is the full hw extent; row dim tr is a multiple of 8.
            # The partial last row block (rows % tr != 0) is computed on
            # garbage rows but never written back.
            in_specs=[pl.BlockSpec((tr, hw), lambda i: (i, 0))],
            out_specs=pl.BlockSpec((tr, hw), lambda i: (i, 0)),
        ),
        compiler_params=pltpu.CompilerParams(
            dimension_semantics=("parallel",),
            # 48 MiB scoped VMEM: raises v5e (16 MiB) / v6e (32 MiB) defaults,
            # stays under v7x's 64 MiB physical; ~4 MiB blocks double-buffered
            # for input + output use ~16 MiB.
            vmem_limit_bytes=48 * 1024 * 1024,
        ),
        cost_estimate=cost,
    )(x)

    return out.reshape(n, c, hw)


if __name__ == "__main__":
    key = jax.random.PRNGKey(0)
    n, c, h, w = 2, 4, 16, 16
    x = jax.random.normal(key, (n, c, h, w), dtype=jnp.float32)

    y = channel_norm(x)
    y = jax.block_until_ready(y)

    # Reference check (plain JAX).
    ref = jax.nn.softmax(x.reshape(n, c, h * w), axis=-1)
    assert y.shape == (n, c, h * w)
    assert jnp.allclose(y, ref, atol=1e-5, rtol=1e-4), float(
        jnp.max(jnp.abs(y - ref))
    )

    print("KERNEL_OK")
</pallas_src>

<mosaic_0001>
module attributes {stable_mosaic.version = 11 : i64} {
  func.func @_softmax_rows_kernel(%arg0: i32, %arg1: memref<8x256xf32, #tpu.memory_space<vmem>>, %arg2: memref<8x256xf32, #tpu.memory_space<vmem>>) attributes {dimension_semantics = [#tpu.dimension_semantics<parallel>], iteration_bounds = array<i64: 1>, scalar_prefetch = 0 : i64, scratch_operands = 0 : i64, tpu.core_type = #tpu.core_type<tc>, window_params = [{transform_indices = @transform_0, window_bounds = array<i64: 8, 256>}, {transform_indices = @transform_1, window_bounds = array<i64: 8, 256>}]} {
    %c0 = arith.constant 0 : index
    %c0_0 = arith.constant 0 : index
    %0 = vector.load %arg1[%c0, %c0_0] : memref<8x256xf32, #tpu.memory_space<vmem>>, vector<8x256xf32>
    %cst = arith.constant dense<0xFF800000> : vector<8xf32>
    %1 = vector.multi_reduction <maximumf>, %0, %cst [1] : vector<8x256xf32> to vector<8xf32>
    %2 = vector.shape_cast %1 : vector<8xf32> to vector<8x1xf32>
    %3 = vector.broadcast %2 : vector<8x1xf32> to vector<8x256xf32>
    %4 = arith.subf %0, %3 : vector<8x256xf32>
    %5 = math.exp %4 : vector<8x256xf32>
    %cst_1 = arith.constant dense<0.000000e+00> : vector<8xf32>
    %6 = vector.multi_reduction <add>, %5, %cst_1 [1] : vector<8x256xf32> to vector<8xf32>
    %7 = vector.shape_cast %6 : vector<8xf32> to vector<8x1xf32>
    %8 = vector.broadcast %7 : vector<8x1xf32> to vector<8x256xf32>
    %9 = arith.divf %5, %8 : vector<8x256xf32>
    %c0_2 = arith.constant 0 : index
    %c0_3 = arith.constant 0 : index
    %10 = vector.load %arg2[%c0_2, %c0_3] : memref<8x256xf32, #tpu.memory_space<vmem>>, vector<8x256xf32>
    tpu.vector_store %arg2[%c0_2, %c0_3], %9 {strides = array<i32>} : memref<8x256xf32, #tpu.memory_space<vmem>>, vector<8x256xf32>,
    return
  }
  func.func @transform_0(%arg0: i32) -> (i32, i32) {
    %c0_i32 = arith.constant 0 : i32
    %c0_i32_0 = arith.constant 0 : i32
    return %arg0, %c0_i32 : i32, i32
  }
  func.func @transform_1(%arg0: i32) -> (i32, i32) {
    %c0_i32 = arith.constant 0 : i32
    %c0_i32_0 = arith.constant 0 : i32
    return %arg0, %c0_i32 : i32, i32
  }
}

</mosaic_0001>

<bundles_post_ra>
// kernel: tpu_custom_call.1
= control target key start
LH: loop header
LB: loop body
LE: loop exit
PB: predicated region body
PF: predicated region fallthrough
CT: control target
= control target key end

     0   :  { %6 = vsyncpa [#allocation3], 0  ;;  %s147_s0 = inlined_call_operand.hbm [shape: f32[8,256], index: 0, kind: input, shape index: {}]   ;;  %s148_s1 = inlined_call_operand.hbm [shape: f32[8,256], index: 1, kind: output, shape index: {}]  }
   0x1   :  { %7 = vsyncpa [#allocation4], 0  ;;  %s111_s6 = smov [#allocation2]   ;;  %s63_s10 = scalar_lea.hbm %s147_s0, 256 }
   0x2   :  { %s14_s7 = sshll.u32 %s111_s6, 4  ;;  %p64_p0 = scmp.ne.s32.totalorder %s147_s0, %s63_s10  ;;  %s15_s7 = int_to_ptr.vmem [resolvable:$true] %s14_s7 }
   0x3   :  { %p67_p1 = scmp.lt.u32.totalorder %s63_s10, %s147_s0 }
   0x5   :  { %p69_p2 = pnand %p67_p1, %p64_p0 }
   0x7   :  { %72 = shalt.err (!%p69_p2)
}
   0x8   :  { %s73_s15 = scalar_lea.vmem %s15_s7, 256  ;;  %p78_p4 = scmp.lt.s32.totalorder %s15_s7, %s15_s7 }
   0x9   :  { %p74_p3 = scmp.ne.s32.totalorder %s15_s7, %s73_s15  ;;  %p79_p5 = scmp.lt.s32.totalorder %s73_s15, %s73_s15 }
   0xb   :  { %p80_p6 = por %p79_p5, %p78_p4 }
   0xd   :  { %p81_p7 = pnand %p80_p6, %p74_p3 }
   0xf   :  { %84 = shalt.err (!%p81_p7)
}
  0x10   :  { %17 = dma.hbm_to_vmem [thread:$0]  %s147_s0, 256, %s15_s7, [#allocation3]  }
  0x11   :  { %107 = dma.done.wait [#allocation3], 256  }
  0x12   :  { %108 = vsyncadd [#allocation3], 4294967040  ;;  %v21_v0 = vld [vmem:[#allocation2] sm:$0xff]  ;;  %v22_v1 = vld [vmem:[#allocation2 + $0x8] sm:$0xff]  ;;  %s112_s0 = smov [#allocation5]  }
  0x13   :  { %v23_v2 = vmax.f32 %v21_v0, %v22_v1  ;;  %s46_s18 = sshll.u32 %s112_s0, 4  ;;  %s47_s18 = int_to_ptr.vmem [resolvable:$true] %s46_s18 }
  0x14   :  { %s85_s19 = scalar_lea.vmem %s47_s18, 256  ;;  %p90_p9 = scmp.lt.s32.totalorder %s47_s18, %s47_s18 }
  0x15   :  { %24 = vmax.xlane.f32.xlu0 %v23_v2  ;;  %p86_p8 = scmp.ne.s32.totalorder %s47_s18, %s85_s19  ;;  %p91_p10 = scmp.lt.s32.totalorder %s85_s19, %s85_s19 }
  0x17   :  { %p92_p11 = por %p91_p10, %p90_p9 }
  0x19   :  { %p93_p12 = pnand %p92_p11, %p86_p8 }
  0xa2   :  { %v25_v3 = vpop.xlane.xlu0 %24 }
  0xa3   :  { %v26_v4 = vsub.f32 %v21_v0, %v25_v3  ;;  %v27_v5 = vsub.f32 %v22_v1, %v25_v3 }
  0xa5   :  { %v28_v6 = vmul.f32 1.442695, %v26_v4  ;;  %v30_v7 = vmul.f32 1.442695, %v27_v5 }
  0xa7   :  { %57 = vpow2.f32 %v28_v6 }
  0xa8   :  { %59 = vpow2.f32 %v30_v7 }
  0xb1   :  { %v58_v8 = vpop.eup %57 }
  0xb2   :  { %v60_v9 = vpop.eup %59 }
  0xb3   :  { %v32_v10 = vadd.f32 %v60_v9, %v58_v8 }
  0xb5   :  { %33 = vadd.xlane.f32.xlu0 %v32_v10 }
 0x142   :  { %v34_v11 = vpop.xlane.xlu0 %33 }
 0x143   :  { %61 = vrcp.f32 %v34_v11 }
 0x14d   :  { %v62_v12 = vpop.eup %61 }
 0x14e   :  { %v36_v13 = vmul.f32 %v62_v12, %v58_v8  ;;  %v37_v14 = vmul.f32 %v62_v12, %v60_v9 }
 0x150   :  { %38 = vst [vmem:[#allocation5] sm:$0xff] %v36_v13  ;;  %39 = vst [vmem:[#allocation5 + $0x8] sm:$0xff] %v37_v14 }
 0x151   :  { %96 = shalt.err (!%p93_p12)
}
 0x152   :  { %s97_s22 = scalar_lea.hbm %s148_s1, 256 }
 0x153   :  { %p98_p13 = scmp.ne.s32.totalorder %s148_s1, %s97_s22  ;;  %p101_p0 = scmp.lt.u32.totalorder %s97_s22, %s148_s1 }
 0x155   :  { %p103_p1 = pnand %p101_p0, %p98_p13 }
 0x157   :  { %106 = shalt.err (!%p103_p1)
}
 0x158   :  { %49 = dma.vmem_to_hbm [thread:$0]  %s47_s18, 256, %s148_s1, [#allocation4]  }
 0x159   :  { %109 = dma.done.wait [#allocation4], 256  }
 0x15a   :  { %110 = vsyncadd [#allocation4], 4294967040 }
 0x15b   :  { %53 = vsyncpa [#allocation3], 1 }
 0x15c   :  { %54 = vsyncpa [#allocation4], 1 }

</bundles_post_ra>
